<compile_context>
chip_gen: v5e
topology: v5e:2x2
jax: 0.10.0
libtpu: 0.0.40
codegen_flags: <defaults>
</compile_context>

<pallas_src>
import functools

import jax
import jax.numpy as jnp
import numpy as np
from jax.experimental import pallas as pl
from jax.experimental.pallas import tpu as pltpu


def _device_kind():
    try:
        return jax.devices()[0].device_kind.lower()
    except Exception:
        return ""


def _num_tensorcores():
    """Best-effort TensorCores-per-device count (perf heuristic only)."""
    kind = _device_kind()
    if "v5p" in kind or "v7" in kind or ("v4" in kind and "lite" not in kind):
        return 2
    return 1


def _vmem_limit_bytes():
    """Scoped-VMEM limit to request: half of physical VMEM, capped at 64 MiB."""
    cap = None
    try:
        cap = int(getattr(pltpu.get_tpu_info(), "vmem_capacity_bytes", 0)) or None
    except Exception:
        cap = None
    kind = _device_kind()
    if cap is None:
        cap = 64 * 1024 * 1024 if ("v7" in kind or not kind) else 128 * 1024 * 1024
    if "v7" in kind:                       # v7x: 64 MiB per TensorCore
        cap = min(cap, 64 * 1024 * 1024)
    return min(cap // 2, 64 * 1024 * 1024)


def _choose_tiles(B, C, H, W, itemsize):
    """Pick (Bt, Ht, vmem_limit): batch items / heatmap rows per grid step."""
    base_limit = _vmem_limit_bytes()
    # Live working set per block ~= 2x double-buffered native input + 2x native
    # output buffers + ~4 block-sized f32 temporaries (xt, mv, mask/where).
    bytes_per_elem = 4 * itemsize + 16
    # Keep the block working set to ~half the scoped limit (headroom for scratch,
    # the small index-map inputs and compiler spill space).
    max_elems = max((base_limit // 2) // bytes_per_elem, 8 * 128)

    # Last block dim (Ht*W) must be a multiple of 128 or the full extent H*W.
    h_divs = [d for d in range(1, H + 1) if H % d == 0]
    legal = [d for d in h_divs if (d * W) % 128 == 0 or d == H]
    fitting = [d for d in legal if C * d * W <= max_elems]
    # Largest row tile within budget; if nothing fits, degrade to the smallest
    # legal tile (never blow past the budget with a full-H block).
    Ht = max(fitting) if fitting else min(legal)

    per_batch = C * Ht * W
    max_bt = max(1, max_elems // per_batch)
    if B >= 2 and _num_tensorcores() >= 2:
        # Reserve >=2 parallel batch steps only when there are 2 TensorCores to
        # use them (v7x / megacore).  On single-TC v5e/v6e this would only
        # shrink the blocks for no benefit.
        max_bt = min(max_bt, max(1, B // 2))
    Bt = max(d for d in range(1, B + 1) if B % d == 0 and d <= max_bt)

    vmem_limit = max(base_limit, Bt * per_batch * bytes_per_elem + (2 << 20))
    return Bt, Ht, int(vmem_limit)


@functools.partial(jax.jit, static_argnums=(1, 2, 3))
def _forward(x, Bt, Ht, vmem_limit):
    B, C, H, W = x.shape
    in_dtype = x.dtype
    nb, nh = B // Bt, H // Ht
    L = Ht * W                         # lane-dense last block dim

    def kernel(x_ref, rmap_ref, wmap_ref, mv_ref, kz_ref,
               best_s, row_s, col_s, zeta_s):
        h = pl.program_id(1)

        # ---- normalize this (Bt, C, L) tile (f32 math only in VMEM) ----
        xt = x_ref[...].astype(jnp.float32)
        sumsq = jnp.sum(xt * xt, axis=1, keepdims=True)          # (Bt, 1, L)
        # rsqrt(max(s, 1e-24)) == 1 / max(sqrt(s), 1e-12): one EUP op per pixel.
        inv = jax.lax.rsqrt(jnp.maximum(sumsq, 1e-24))
        mv = xt * inv                                            # (Bt, C, L) f32
        mv_ref[...] = mv.astype(mv_ref.dtype)

        @pl.when(h == 0)
        def _init():
            best_s[...] = jnp.full(best_s.shape, -jnp.inf, best_s.dtype)
            row_s[...] = jnp.zeros_like(row_s)
            col_s[...] = jnp.zeros_like(col_s)
            zeta_s[...] = jnp.zeros_like(zeta_s)

        # ---- running zeta ----
        zeta_s[...] = zeta_s[...] + jnp.sum(mv, axis=2, keepdims=True)

        # ---- running (row, col) of the per-channel global maximum ----
        #   row = min{h : max_w mv[h, .] == M},  col = min{w : max_h mv[., w] == M}
        # so per tile only the tile max plus masked mins of the row/col index
        # maps are needed (no per-row loop, no colmax scratch).
        tmax = jnp.max(mv, axis=2, keepdims=True)                # (Bt, C, 1)
        mask = mv == tmax
        rcand = jnp.min(jnp.where(mask, rmap_ref[...], jnp.int32(Ht)),
                        axis=2, keepdims=True)                   # local row in tile
        wcand = jnp.min(jnp.where(mask, wmap_ref[...], jnp.int32(W)),
                        axis=2, keepdims=True)                   # column

        best = best_s[...]
        better = tmax > best           # strict '>' keeps the earliest row tile
        equal = tmax == best
        best_s[...] = jnp.where(better, tmax, best)
        row_s[...] = jnp.where(better, h * Ht + rcand, row_s[...])
        # Column ties across row tiles must still take the smallest column.
        col_s[...] = jnp.where(better, wcand,
                               jnp.where(equal, jnp.minimum(col_s[...], wcand),
                                         col_s[...]))

        @pl.when(h == nh - 1)
        def _finalize():
            lane = jax.lax.broadcasted_iota(jnp.int32, (Bt, C, 4), 2)
            rowf = row_s[...].astype(jnp.float32)   # exact: H, W << 2^24
            colf = col_s[...].astype(jnp.float32)
            packed = jnp.where(lane == 0, rowf,
                     jnp.where(lane == 1, colf,
                     jnp.where(lane == 2, zeta_s[...], 0.0)))
            kz_ref[...] = packed

    x2 = x.reshape(B, C, H * W)        # lane-dense bulk layout (free reshape)
    # Static per-tile (local row, column) index maps; constant block index so
    # they are DMA'd into VMEM once and stay resident across the grid.
    rmap = jnp.asarray(np.repeat(np.arange(Ht, dtype=np.int32), W)).reshape(1, 1, L)
    wmap = jnp.asarray(np.tile(np.arange(W, dtype=np.int32), Ht)).reshape(1, 1, L)

    grid_spec = pltpu.PrefetchScalarGridSpec(
        num_scalar_prefetch=0,
        grid=(nb, nh),
        in_specs=[
            pl.BlockSpec((Bt, C, L), lambda b, h: (b, 0, h)),
            pl.BlockSpec((1, 1, L), lambda b, h: (0, 0, 0)),
            pl.BlockSpec((1, 1, L), lambda b, h: (0, 0, 0)),
        ],
        out_specs=(
            pl.BlockSpec((Bt, C, L), lambda b, h: (b, 0, h)),    # map_val_all
            pl.BlockSpec((Bt, C, 4), lambda b, h: (b, 0, 0)),    # [row, col, zeta, 0]
        ),
        scratch_shapes=[
            pltpu.VMEM((Bt, C, 1), jnp.float32),   # running best value
            pltpu.VMEM((Bt, C, 1), jnp.int32),     # running best row
            pltpu.VMEM((Bt, C, 1), jnp.int32),     # running best col
            pltpu.VMEM((Bt, C, 1), jnp.float32),   # running zeta accumulator
        ],
    )

    mv2, kz = pl.pallas_call(
        kernel,
        grid_spec=grid_spec,
        out_shape=(
            jax.ShapeDtypeStruct((B, C, H * W), in_dtype),
            jax.ShapeDtypeStruct((B, C, 4), jnp.float32),
        ),
        compiler_params=pltpu.CompilerParams(
            dimension_semantics=("parallel", "arbitrary"),
            vmem_limit_bytes=int(vmem_limit),
        ),
        # input_output_aliases={0: 0} would let XLA donate x's HBM buffer to
        # map_val_all; intentionally left off so callers may keep using x.
    )(x2, rmap, wmap)

    map_val_all = mv2.reshape(B, C, H, W)
    keypoint = kz[:, :, 0:2]                       # (B, C, 2) float32
    get_zeta = kz[:, :, 2].astype(in_dtype)        # (B, C)
    return map_val_all, keypoint, get_zeta


def detection_confidence_map2keypoint(combined_hm_preds, cur_batch=None, *,
                                      tile_override=None):
    """Returns (map_val_all (B,C,H,W), keypoint (B,C,2) float32, get_zeta (B,C))."""
    del cur_batch                      # unused by the reference forward as well
    x = combined_hm_preds
    B, C, H, W = x.shape
    if tile_override is not None:      # (Bt, Ht) -- used by the self-test
        Bt, Ht = tile_override
        vmem_limit = 64 * 1024 * 1024
    else:
        Bt, Ht, vmem_limit = _choose_tiles(B, C, H, W, x.dtype.itemsize)
    return _forward(x, int(Bt), int(Ht), int(vmem_limit))


def _reference(x):
    # Pure-JAX mirror of the PyTorch forward, for sanity checking.
    x = x.astype(jnp.float32)
    norm = jnp.sqrt(jnp.sum(x * x, axis=1, keepdims=True))
    mv = x / jnp.maximum(norm, 1e-12)
    zeta = jnp.sum(mv, axis=(2, 3))
    my_col = jnp.argmax(jnp.max(mv, axis=2), axis=2)
    my_row = jnp.argmax(jnp.max(mv, axis=3), axis=2)
    kp = jnp.stack([my_row, my_col], axis=2).astype(jnp.float32)
    return mv, kp, zeta


if __name__ == "__main__":
    key = jax.random.PRNGKey(0)
    keys = jax.random.split(key, 3)

    cases = [
        ((2, 4, 16, 16), None),     # auto tiling, single-tile path
        ((2, 4, 64, 16), None),     # auto tiling (fits one row tile)
        ((2, 4, 64, 16), (1, 8)),   # forced multi-row-tile accumulation path
    ]
    for (shape, override), k in zip(cases, keys):
        B, C, H, W = shape
        x = jax.random.normal(k, shape, dtype=jnp.float32)

        mv, kp, zeta = detection_confidence_map2keypoint(
            x, cur_batch=B, tile_override=override)
        jax.block_until_ready((mv, kp, zeta))

        mv_r, kp_r, zeta_r = _reference(x)
        assert mv.shape == (B, C, H, W) and kp.shape == (B, C, 2) and zeta.shape == (B, C)
        np.testing.assert_allclose(np.asarray(mv), np.asarray(mv_r), rtol=1e-5, atol=1e-5)
        np.testing.assert_allclose(np.asarray(zeta), np.asarray(zeta_r), rtol=1e-4, atol=1e-3)
        np.testing.assert_array_equal(np.asarray(kp), np.asarray(kp_r))

    print("KERNEL_OK")
</pallas_src>

<mosaic_0001>
module attributes {stable_mosaic.version = 11 : i64} {
  func.func @kernel(%arg0: i32, %arg1: i32, %arg2: memref<2x4x256xf32, #tpu.memory_space<vmem>>, %arg3: memref<1x1x256xi32, #tpu.memory_space<vmem>>, %arg4: memref<1x1x256xi32, #tpu.memory_space<vmem>>, %arg5: memref<2x4x256xf32, #tpu.memory_space<vmem>>, %arg6: memref<2x4x4xf32, #tpu.memory_space<vmem>>, %arg7: memref<2x4x1xf32, #tpu.memory_space<vmem>>, %arg8: memref<2x4x1xi32, #tpu.memory_space<vmem>>, %arg9: memref<2x4x1xi32, #tpu.memory_space<vmem>>, %arg10: memref<2x4x1xf32, #tpu.memory_space<vmem>>) attributes {dimension_semantics = [#tpu.dimension_semantics<parallel>, #tpu.dimension_semantics<arbitrary>], iteration_bounds = array<i64: 1, 1>, scalar_prefetch = 0 : i64, scratch_operands = 4 : i64, tpu.core_type = #tpu.core_type<tc>, window_params = [{transform_indices = @transform_0, window_bounds = array<i64: 2, 4, 256>}, {pipeline_mode = #tpu.pipeline_mode<synchronous>, transform_indices = @transform_1, window_bounds = array<i64: 1, 1, 256>}, {pipeline_mode = #tpu.pipeline_mode<synchronous>, transform_indices = @transform_2, window_bounds = array<i64: 1, 1, 256>}, {transform_indices = @transform_3, window_bounds = array<i64: 2, 4, 256>}, {transform_indices = @transform_4, window_bounds = array<i64: 2, 4, 4>}]} {
    %c0 = arith.constant 0 : index
    %c0_0 = arith.constant 0 : index
    %c0_1 = arith.constant 0 : index
    %0 = vector.load %arg2[%c0, %c0_0, %c0_1] : memref<2x4x256xf32, #tpu.memory_space<vmem>>, vector<2x4x256xf32>
    %1 = arith.mulf %0, %0 : vector<2x4x256xf32>
    %cst = arith.constant dense<0.000000e+00> : vector<2x256xf32>
    %2 = vector.multi_reduction <add>, %1, %cst [1] : vector<2x4x256xf32> to vector<2x256xf32>
    %3 = vector.shape_cast %2 : vector<2x256xf32> to vector<2x1x256xf32>
    %cst_2 = arith.constant 1.000000e-24 : f32
    %4 = vector.broadcast %cst_2 : f32 to vector<2x1x256xf32>
    %5 = arith.maximumf %3, %4 : vector<2x1x256xf32>
    %6 = math.rsqrt %5 : vector<2x1x256xf32>
    %7 = vector.broadcast %6 : vector<2x1x256xf32> to vector<2x4x256xf32>
    %8 = arith.mulf %0, %7 : vector<2x4x256xf32>
    %c0_3 = arith.constant 0 : index
    %c0_4 = arith.constant 0 : index
    %c0_5 = arith.constant 0 : index
    %9 = vector.load %arg5[%c0_3, %c0_4, %c0_5] : memref<2x4x256xf32, #tpu.memory_space<vmem>>, vector<2x4x256xf32>
    tpu.vector_store %arg5[%c0_3, %c0_4, %c0_5], %8 {strides = array<i32>} : memref<2x4x256xf32, #tpu.memory_space<vmem>>, vector<2x4x256xf32>,
    %c0_i32 = arith.constant 0 : i32
    %10 = arith.cmpi eq, %arg1, %c0_i32 : i32
    %11 = arith.extui %10 : i1 to i32
    %c0_i32_6 = arith.constant 0 : i32
    %12 = arith.cmpi ne, %11, %c0_i32_6 : i32
    scf.if %12 {
      %cst_48 = arith.constant 0xFF800000 : f32
      %56 = vector.broadcast %cst_48 : f32 to vector<2x4x1xf32>
      %c0_49 = arith.constant 0 : index
      %c0_50 = arith.constant 0 : index
      %c0_51 = arith.constant 0 : index
      %57 = vector.load %arg7[%c0_49, %c0_50, %c0_51] : memref<2x4x1xf32, #tpu.memory_space<vmem>>, vector<2x4x1xf32>
      tpu.vector_store %arg7[%c0_49, %c0_50, %c0_51], %56 {strides = array<i32>} : memref<2x4x1xf32, #tpu.memory_space<vmem>>, vector<2x4x1xf32>,
      %c0_i32_52 = arith.constant 0 : i32
      %58 = vector.broadcast %c0_i32_52 : i32 to vector<2x4x1xi32>
      %c0_53 = arith.constant 0 : index
      %c0_54 = arith.constant 0 : index
      %c0_55 = arith.constant 0 : index
      %59 = vector.load %arg8[%c0_53, %c0_54, %c0_55] : memref<2x4x1xi32, #tpu.memory_space<vmem>>, vector<2x4x1xi32>
      tpu.vector_store %arg8[%c0_53, %c0_54, %c0_55], %58 {strides = array<i32>} : memref<2x4x1xi32, #tpu.memory_space<vmem>>, vector<2x4x1xi32>,
      %c0_i32_56 = arith.constant 0 : i32
      %60 = vector.broadcast %c0_i32_56 : i32 to vector<2x4x1xi32>
      %c0_57 = arith.constant 0 : index
      %c0_58 = arith.constant 0 : index
      %c0_59 = arith.constant 0 : index
      %61 = vector.load %arg9[%c0_57, %c0_58, %c0_59] : memref<2x4x1xi32, #tpu.memory_space<vmem>>, vector<2x4x1xi32>
      tpu.vector_store %arg9[%c0_57, %c0_58, %c0_59], %60 {strides = array<i32>} : memref<2x4x1xi32, #tpu.memory_space<vmem>>, vector<2x4x1xi32>,
      %cst_60 = arith.constant 0.000000e+00 : f32
      %62 = vector.broadcast %cst_60 : f32 to vector<2x4x1xf32>
      %c0_61 = arith.constant 0 : index
      %c0_62 = arith.constant 0 : index
      %c0_63 = arith.constant 0 : index
      %63 = vector.load %arg10[%c0_61, %c0_62, %c0_63] : memref<2x4x1xf32, #tpu.memory_space<vmem>>, vector<2x4x1xf32>
      tpu.vector_store %arg10[%c0_61, %c0_62, %c0_63], %62 {strides = array<i32>} : memref<2x4x1xf32, #tpu.memory_space<vmem>>, vector<2x4x1xf32>,
    } else {
    }
    %c0_7 = arith.constant 0 : index
    %c0_8 = arith.constant 0 : index
    %c0_9 = arith.constant 0 : index
    %13 = vector.load %arg10[%c0_7, %c0_8, %c0_9] : memref<2x4x1xf32, #tpu.memory_space<vmem>>, vector<2x4x1xf32>
    %cst_10 = arith.constant dense<0.000000e+00> : vector<2x4xf32>
    %14 = vector.multi_reduction <add>, %8, %cst_10 [2] : vector<2x4x256xf32> to vector<2x4xf32>
    %15 = vector.shape_cast %14 : vector<2x4xf32> to vector<2x4x1xf32>
    %16 = arith.addf %13, %15 : vector<2x4x1xf32>
    %c0_11 = arith.constant 0 : index
    %c0_12 = arith.constant 0 : index
    %c0_13 = arith.constant 0 : index
    %17 = vector.load %arg10[%c0_11, %c0_12, %c0_13] : memref<2x4x1xf32, #tpu.memory_space<vmem>>, vector<2x4x1xf32>
    tpu.vector_store %arg10[%c0_11, %c0_12, %c0_13], %16 {strides = array<i32>} : memref<2x4x1xf32, #tpu.memory_space<vmem>>, vector<2x4x1xf32>,
    %cst_14 = arith.constant dense<0xFF800000> : vector<2x4xf32>
    %18 = vector.multi_reduction <maximumf>, %8, %cst_14 [2] : vector<2x4x256xf32> to vector<2x4xf32>
    %19 = vector.shape_cast %18 : vector<2x4xf32> to vector<2x4x1xf32>
    %20 = vector.broadcast %19 : vector<2x4x1xf32> to vector<2x4x256xf32>
    %21 = arith.cmpf oeq, %8, %20 : vector<2x4x256xf32>
    %c0_15 = arith.constant 0 : index
    %c0_16 = arith.constant 0 : index
    %c0_17 = arith.constant 0 : index
    %22 = vector.load %arg3[%c0_15, %c0_16, %c0_17] : memref<1x1x256xi32, #tpu.memory_space<vmem>>, vector<1x1x256xi32>
    %c16_i32 = arith.constant 16 : i32
    %23 = vector.shape_cast %22 : vector<1x1x256xi32> to vector<1x1x256xi32>
    %24 = vector.broadcast %23 : vector<1x1x256xi32> to vector<2x4x256xi32>
    %25 = vector.broadcast %c16_i32 : i32 to vector<2x4x256xi32>
    %26 = arith.select %21, %24, %25 : vector<2x4x256xi1>, vector<2x4x256xi32>
    %cst_18 = arith.constant dense<2147483647> : vector<2x4xi32>
    %27 = vector.multi_reduction <minsi>, %26, %cst_18 [2] : vector<2x4x256xi32> to vector<2x4xi32>
    %28 = vector.shape_cast %27 : vector<2x4xi32> to vector<2x4x1xi32>
    %c0_19 = arith.constant 0 : index
    %c0_20 = arith.constant 0 : index
    %c0_21 = arith.constant 0 : index
    %29 = vector.load %arg4[%c0_19, %c0_20, %c0_21] : memref<1x1x256xi32, #tpu.memory_space<vmem>>, vector<1x1x256xi32>
    %c16_i32_22 = arith.constant 16 : i32
    %30 = vector.shape_cast %29 : vector<1x1x256xi32> to vector<1x1x256xi32>
    %31 = vector.broadcast %30 : vector<1x1x256xi32> to vector<2x4x256xi32>
    %32 = vector.broadcast %c16_i32_22 : i32 to vector<2x4x256xi32>
    %33 = arith.select %21, %31, %32 : vector<2x4x256xi1>, vector<2x4x256xi32>
    %cst_23 = arith.constant dense<2147483647> : vector<2x4xi32>
    %34 = vector.multi_reduction <minsi>, %33, %cst_23 [2] : vector<2x4x256xi32> to vector<2x4xi32>
    %35 = vector.shape_cast %34 : vector<2x4xi32> to vector<2x4x1xi32>
    %c0_24 = arith.constant 0 : index
    %c0_25 = arith.constant 0 : index
    %c0_26 = arith.constant 0 : index
    %36 = vector.load %arg7[%c0_24, %c0_25, %c0_26] : memref<2x4x1xf32, #tpu.memory_space<vmem>>, vector<2x4x1xf32>
    %37 = arith.cmpf ogt, %19, %36 : vector<2x4x1xf32>
    %38 = arith.cmpf oeq, %19, %36 : vector<2x4x1xf32>
    %39 = arith.select %37, %19, %36 : vector<2x4x1xi1>, vector<2x4x1xf32>
    %c0_27 = arith.constant 0 : index
    %c0_28 = arith.constant 0 : index
    %c0_29 = arith.constant 0 : index
    %40 = vector.load %arg7[%c0_27, %c0_28, %c0_29] : memref<2x4x1xf32, #tpu.memory_space<vmem>>, vector<2x4x1xf32>
    tpu.vector_store %arg7[%c0_27, %c0_28, %c0_29], %39 {strides = array<i32>} : memref<2x4x1xf32, #tpu.memory_space<vmem>>, vector<2x4x1xf32>,
    %c16_i32_30 = arith.constant 16 : i32
    %41 = arith.muli %arg1, %c16_i32_30 : i32
    %42 = vector.broadcast %41 : i32 to vector<2x4x1xi32>
    %43 = arith.addi %42, %28 : vector<2x4x1xi32>
    %c0_31 = arith.constant 0 : index
    %c0_32 = arith.constant 0 : index
    %c0_33 = arith.constant 0 : index
    %44 = vector.load %arg8[%c0_31, %c0_32, %c0_33] : memref<2x4x1xi32, #tpu.memory_space<vmem>>, vector<2x4x1xi32>
    %45 = arith.select %37, %43, %44 : vector<2x4x1xi1>, vector<2x4x1xi32>
    %c0_34 = arith.constant 0 : index
    %c0_35 = arith.constant 0 : index
    %c0_36 = arith.constant 0 : index
    %46 = vector.load %arg8[%c0_34, %c0_35, %c0_36] : memref<2x4x1xi32, #tpu.memory_space<vmem>>, vector<2x4x1xi32>
    tpu.vector_store %arg8[%c0_34, %c0_35, %c0_36], %45 {strides = array<i32>} : memref<2x4x1xi32, #tpu.memory_space<vmem>>, vector<2x4x1xi32>,
    %c0_37 = arith.constant 0 : index
    %c0_38 = arith.constant 0 : index
    %c0_39 = arith.constant 0 : index
    %47 = vector.load %arg9[%c0_37, %c0_38, %c0_39] : memref<2x4x1xi32, #tpu.memory_space<vmem>>, vector<2x4x1xi32>
    %48 = arith.minsi %47, %35 : vector<2x4x1xi32>
    %c0_40 = arith.constant 0 : index
    %c0_41 = arith.constant 0 : index
    %c0_42 = arith.constant 0 : index
    %49 = vector.load %arg9[%c0_40, %c0_41, %c0_42] : memref<2x4x1xi32, #tpu.memory_space<vmem>>, vector<2x4x1xi32>
    %50 = arith.select %38, %48, %49 : vector<2x4x1xi1>, vector<2x4x1xi32>
    %51 = arith.select %37, %35, %50 : vector<2x4x1xi1>, vector<2x4x1xi32>
    %c0_43 = arith.constant 0 : index
    %c0_44 = arith.constant 0 : index
    %c0_45 = arith.constant 0 : index
    %52 = vector.load %arg9[%c0_43, %c0_44, %c0_45] : memref<2x4x1xi32, #tpu.memory_space<vmem>>, vector<2x4x1xi32>
    tpu.vector_store %arg9[%c0_43, %c0_44, %c0_45], %51 {strides = array<i32>} : memref<2x4x1xi32, #tpu.memory_space<vmem>>, vector<2x4x1xi32>,
    %c0_i32_46 = arith.constant 0 : i32
    %53 = arith.cmpi eq, %arg1, %c0_i32_46 : i32
    %54 = arith.extui %53 : i1 to i32
    %c0_i32_47 = arith.constant 0 : i32
    %55 = arith.cmpi ne, %54, %c0_i32_47 : i32
    scf.if %55 {
      %56 = tpu.iota {dimensions = array<i32: 2>} : vector<2x4x4xi32>
      %c0_48 = arith.constant 0 : index
      %c0_49 = arith.constant 0 : index
      %c0_50 = arith.constant 0 : index
      %57 = vector.load %arg8[%c0_48, %c0_49, %c0_50] : memref<2x4x1xi32, #tpu.memory_space<vmem>>, vector<2x4x1xi32>
      %58 = arith.sitofp %57 : vector<2x4x1xi32> to vector<2x4x1xf32>
      %c0_51 = arith.constant 0 : index
      %c0_52 = arith.constant 0 : index
      %c0_53 = arith.constant 0 : index
      %59 = vector.load %arg9[%c0_51, %c0_52, %c0_53] : memref<2x4x1xi32, #tpu.memory_space<vmem>>, vector<2x4x1xi32>
      %60 = arith.sitofp %59 : vector<2x4x1xi32> to vector<2x4x1xf32>
      %c0_i32_54 = arith.constant 0 : i32
      %61 = vector.broadcast %c0_i32_54 : i32 to vector<2x4x4xi32>
      %62 = arith.cmpi eq, %56, %61 : vector<2x4x4xi32>
      %c1_i32 = arith.constant 1 : i32
      %63 = vector.broadcast %c1_i32 : i32 to vector<2x4x4xi32>
      %64 = arith.cmpi eq, %56, %63 : vector<2x4x4xi32>
      %c2_i32 = arith.constant 2 : i32
      %65 = vector.broadcast %c2_i32 : i32 to vector<2x4x4xi32>
      %66 = arith.cmpi eq, %56, %65 : vector<2x4x4xi32>
      %c0_55 = arith.constant 0 : index
      %c0_56 = arith.constant 0 : index
      %c0_57 = arith.constant 0 : index
      %67 = vector.load %arg10[%c0_55, %c0_56, %c0_57] : memref<2x4x1xf32, #tpu.memory_space<vmem>>, vector<2x4x1xf32>
      %cst_58 = arith.constant 0.000000e+00 : f32
      %68 = vector.shape_cast %67 : vector<2x4x1xf32> to vector<2x4x1xf32>
      %69 = vector.broadcast %68 : vector<2x4x1xf32> to vector<2x4x4xf32>
      %70 = vector.broadcast %cst_58 : f32 to vector<2x4x4xf32>
      %71 = arith.select %66, %69, %70 : vector<2x4x4xi1>, vector<2x4x4xf32>
      %72 = vector.shape_cast %60 : vector<2x4x1xf32> to vector<2x4x1xf32>
      %73 = vector.broadcast %72 : vector<2x4x1xf32> to vector<2x4x4xf32>
      %74 = arith.select %64, %73, %71 : vector<2x4x4xi1>, vector<2x4x4xf32>
      %75 = vector.shape_cast %58 : vector<2x4x1xf32> to vector<2x4x1xf32>
      %76 = vector.broadcast %75 : vector<2x4x1xf32> to vector<2x4x4xf32>
      %77 = arith.select %62, %76, %74 : vector<2x4x4xi1>, vector<2x4x4xf32>
      %c0_59 = arith.constant 0 : index
      %c0_60 = arith.constant 0 : index
      %c0_61 = arith.constant 0 : index
      %78 = vector.load %arg6[%c0_59, %c0_60, %c0_61] : memref<2x4x4xf32, #tpu.memory_space<vmem>>, vector<2x4x4xf32>
      tpu.vector_store %arg6[%c0_59, %c0_60, %c0_61], %77 {strides = array<i32>} : memref<2x4x4xf32, #tpu.memory_space<vmem>>, vector<2x4x4xf32>,
    } else {
    }
    return
  }
  func.func @transform_0(%arg0: i32, %arg1: i32) -> (i32, i32, i32) {
    %c0_i32 = arith.constant 0 : i32
    %c0_i32_0 = arith.constant 0 : i32
    return %arg0, %c0_i32, %arg1 : i32, i32, i32
  }
  func.func @transform_1(%arg0: i32, %arg1: i32) -> (i32, i32, i32) {
    %c0_i32 = arith.constant 0 : i32
    %c0_i32_0 = arith.constant 0 : i32
    %c0_i32_1 = arith.constant 0 : i32
    %c0_i32_2 = arith.constant 0 : i32
    return %c0_i32, %c0_i32_0, %c0_i32_1 : i32, i32, i32
  }
  func.func @transform_2(%arg0: i32, %arg1: i32) -> (i32, i32, i32) {
    %c0_i32 = arith.constant 0 : i32
    %c0_i32_0 = arith.constant 0 : i32
    %c0_i32_1 = arith.constant 0 : i32
    %c0_i32_2 = arith.constant 0 : i32
    return %c0_i32, %c0_i32_0, %c0_i32_1 : i32, i32, i32
  }
  func.func @transform_3(%arg0: i32, %arg1: i32) -> (i32, i32, i32) {
    %c0_i32 = arith.constant 0 : i32
    %c0_i32_0 = arith.constant 0 : i32
    return %arg0, %c0_i32, %arg1 : i32, i32, i32
  }
  func.func @transform_4(%arg0: i32, %arg1: i32) -> (i32, i32, i32) {
    %c0_i32 = arith.constant 0 : i32
    %c0_i32_0 = arith.constant 0 : i32
    %c0_i32_1 = arith.constant 0 : i32
    return %arg0, %c0_i32, %c0_i32_0 : i32, i32, i32
  }
}

</mosaic_0001>

<bundles_post_ra>
// kernel: _forward.1
= control target key start
LH: loop header
LB: loop body
LE: loop exit
PB: predicated region body
PF: predicated region fallthrough
CT: control target
= control target key end

     0   :  { %vm33_vm0 = vcmask 1043456   ;;  %vm124_vm13 = vcmask 3072   ;;  %s588_s0 = inlined_call_operand.vmem [shape: f32[2,4,256], index: 0, kind: input, shape index: {}]   ;;  %s589_s3 = inlined_call_operand.vmem [shape: f32[2,4,256], index: 3, kind: output, shape index: {0}]   ;;  %s590_s1 = inlined_call_operand.vmem [shape: s32[1,1,256], index: 1, kind: input, shape index: {}]   ;;  %s591_s2 = inlined_call_operand.vmem [shape: s32[1,1,256], index: 2, kind: input, shape index: {}]   ;;  %s592_s4 = inlined_call_operand.vmem [shape: f32[2,4,4], index: 4, kind: output, shape index: {1}]  }
   0x1   :  { %v442_v0 = vld [vmem:[%s588_s0] sm:$0xff]  ;;  %v447_v1 = vld [vmem:[%s588_s0 + $0x8] sm:$0xff] }
   0x2   :  { %v18_v2 = vmul.f32 %v442_v0, %v442_v0  ;;  %v19_v3 = vmul.f32 %v447_v1, %v447_v1 }
   0x4   :  { %22 = vst [vmem:[#allocation1] ss:$2 sm:$0xff] %v18_v2 }
   0x5   :  { %26 = vst [vmem:[#allocation1 + $0x10] ss:$2 sm:$0xff] %v19_v3 }
   0xb   :  { %v23_v4 = vld.sshfl [vmem:[#allocation1] sm:$0xff pattern:$0x75316420]  ;;  %v24_v5 = vld.sshfl [vmem:[#allocation1 + $0x8] sm:$0xff pattern:$0x75316420] }
   0xc   :  { %v34_v6 = vsel %vm33_vm0, %v23_v4, 0.0  ;;  %v41_v7 = vsel %vm33_vm0, %v24_v5, 0.0  ;;  %v27_v8 = vld.sshfl [vmem:[#allocation1 + $0x10] sm:$0xff pattern:$0x75316420] }
   0xd   :  { %v35_v9 = vrot.slane %v34_v6, 4  ;;  %v42_v10 = vrot.slane %v41_v7, 4  ;;  %v28_v11 = vld.sshfl [vmem:[#allocation1 + $0x18] sm:$0xff pattern:$0x75316420]  ;;  %v48_v12 = vsel %vm33_vm0, %v27_v8, 0.0 }
   0xe   :  { %v49_v13 = vrot.slane %v48_v12, 4  ;;  %v55_v14 = vsel %vm33_vm0, %v28_v11, 0.0 }
   0xf   :  { %v36_v15 = vadd.f32 %v35_v9, %v34_v6  ;;  %v43_v16 = vadd.f32 %v42_v10, %v41_v7  ;;  %v56_v17 = vrot.slane %v55_v14, 4  ;;  %v410_v9 = vmov -inf  }
  0x10   :  { %v50_v18 = vadd.f32 %v49_v13, %v48_v12  ;;  %125 = vst.msk [vmem:[#allocation2] sm:$0xf] %vm124_vm13, %v410_v9 }
  0x11   :  { %v37_v19 = vrot.slane %v36_v15, 2  ;;  %v44_v20 = vrot.slane %v43_v16, 2  ;;  %v57_v21 = vadd.f32 %v56_v17, %v55_v14  ;;  %126 = vst.msk [vmem:[#allocation2 + $0x4] sm:$0xf] %vm124_vm13, %v410_v9 }
  0x12   :  { %v51_v22 = vrot.slane %v50_v18, 2 }
  0x13   :  { %v38_v23 = vadd.f32 %v37_v19, %v36_v15  ;;  %v45_v24 = vadd.f32 %v44_v20, %v43_v16  ;;  %v58_v25 = vrot.slane %v57_v21, 2 }
  0x14   :  { %v52_v26 = vadd.f32 %v51_v22, %v50_v18 }
  0x15   :  { %v39_v27 = vrot.slane %v38_v23, 1  ;;  %v46_v28 = vrot.slane %v45_v24, 1  ;;  %v59_v29 = vadd.f32 %v58_v25, %v57_v21 }
  0x16   :  { %v53_v30 = vrot.slane %v52_v26, 1 }
  0x17   :  { %v40_v31 = vadd.f32 %v39_v27, %v38_v23  ;;  %v47_v32 = vadd.f32 %v46_v28, %v45_v24  ;;  %v60_v33 = vrot.slane %v59_v29, 1  ;;  %v198_v27 = vld [vmem:[%s590_s1] sm:$0x3]  ;;  %v411_v28 = vmov 839922192  }
  0x18   :  { %v54_v34 = vadd.f32 %v53_v30, %v52_v26  ;;  %v200_v30 = vperm.slane %v198_v27, 1 }
  0x19   :  { %v62_v35 = vmax.f32 %v40_v31, 1e-24  ;;  %v63_v36 = vmax.f32 %v47_v32, 1e-24  ;;  %v61_v37 = vadd.f32 %v60_v33, %v59_v29  ;;  %v187_v29 = vunpack.c.l.s4 %v411_v28 }
  0x1a   :  { %v64_v38 = vmax.f32 %v54_v34, 1e-24  ;;  %v199_v32 = vperm.slane %v198_v27, 0  ;;  %v201_v33 = vrot.slane %v200_v30, 4  ;;  %v501_v34 = vld [vmem:[#allocation2] sm:$0xf] }
  0x1b   :  { %402 = vrsqrt.f32 %v62_v35  ;;  %v65_v39 = vmax.f32 %v61_v37, 1e-24  ;;  %vm72_vm1 = vweird.f32 %v62_v35  ;;  %vm82_vm3 = vweird.f32 %v63_v36 }
  0x1c   :  { %404 = vrsqrt.f32 %v63_v36  ;;  %vm92_vm5 = vweird.f32 %v64_v38  ;;  %v188_v31 = vunpack.c.0.s8 %v187_v29  ;;  %v202_v37 = vsel %vm33_vm0, %v199_v32, %v201_v33 }
  0x1d   :  { %406 = vrsqrt.f32 %v64_v38  ;;  %vm102_vm8 = vweird.f32 %v65_v39 }
  0x1e   :  { %408 = vrsqrt.f32 %v65_v39 }
  0x21   :  { %v403_v40 = vpop.eup %402 }
  0x22   :  { %v405_v41 = vpop.eup %404  ;;  %v67_v42 = vmul.f32 %v403_v40, %v62_v35  ;;  %vm73_vm2 = vweird.f32 %v403_v40  ;;  %v248_v35 = vld [vmem:[%s591_s2] sm:$0x3] }
  0x23   :  { %v407_v43 = vpop.eup %406  ;;  %v77_v44 = vmul.f32 %v405_v41, %v63_v36  ;;  %vm83_vm4 = vweird.f32 %v405_v41  ;;  %vm457_vm7 = vmor %vm72_vm1, %vm73_vm2 }
  0x24   :  { %v409_v45 = vpop.eup %408  ;;  %v68_v46 = vmul.f32 %v403_v40, %v67_v42  ;;  %v87_v47 = vmul.f32 %v407_v43, %v64_v38  ;;  %vm93_vm6 = vweird.f32 %v407_v43  ;;  %vm84_vm10 = vmor %vm82_vm3, %vm83_vm4  ;;  %v249_v42 = vperm.slane %v248_v35, 0 }
  0x25   :  { %v78_v48 = vmul.f32 %v405_v41, %v77_v44  ;;  %v97_v49 = vmul.f32 %v409_v45, %v65_v39  ;;  %vm103_vm9 = vweird.f32 %v409_v45  ;;  %vm461_vm11 = vmor %vm92_vm5, %vm93_vm6  ;;  %v250_v39 = vperm.slane %v248_v35, 1  ;;  %v521_v44 = vld [vmem:[#allocation2 + $0x4] sm:$0xf] }
  0x26   :  { %v69_v50 = vmul.f32 0.5, %v68_v46  ;;  %v88_v51 = vmul.f32 %v407_v43, %v87_v47  ;;  %vm104_vm12 = vmor %vm102_vm8, %vm103_vm9 }
  0x27   :  { %v79_v52 = vmul.f32 0.5, %v78_v48  ;;  %v98_v53 = vmul.f32 %v409_v45, %v97_v49 }
  0x28   :  { %v70_v54 = vsub.f32 1.5, %v69_v50  ;;  %v89_v55 = vmul.f32 0.5, %v88_v51 }
  0x29   :  { %v80_v57 = vsub.f32 1.5, %v79_v52  ;;  %v99_v58 = vmul.f32 0.5, %v98_v53 }
  0x2a   :  { %v71_v59 = vmul.f32 %v403_v40, %v70_v54  ;;  %v90_v60 = vsub.f32 1.5, %v89_v55 }
  0x2b   :  { %v81_v61 = vmul.f32 %v405_v41, %v80_v57  ;;  %v100_v63 = vsub.f32 1.5, %v99_v58 }
  0x2c   :  { %v91_v2 = vmul.f32 %v407_v43, %v90_v60  ;;  %v75_v3 = vsel %vm457_vm7, %v403_v40, %v71_v59 }
  0x2d   :  { %v85_v4 = vsel %vm84_vm10, %v405_v41, %v81_v61  ;;  %v101_v5 = vmul.f32 %v409_v45, %v100_v63 }
  0x2e   :  { %v110_v6 = vrot.slane %v85_v4, 4  ;;  %v95_v7 = vsel %vm461_vm11, %v407_v43, %v91_v2  ;;  %v251_v43 = vrot.slane %v250_v39, 4 }
  0x2f   :  { %v105_v8 = vsel %vm104_vm12, %v409_v45, %v101_v5 }
  0x30   :  { %v112_v10 = vsel %vm33_vm0, %v75_v3, %v110_v6  ;;  %v111_v11 = vrot.slane %v105_v8, 4  ;;  %v252_v47 = vsel %vm33_vm0, %v249_v42, %v251_v43  ;;  %v413_v43 = vmov 0.0  }
  0x31   :  { %v116_v12 = vmul.f32 %v112_v10, %v442_v0  ;;  %132 = vst.msk [vmem:[#allocation5 + $0x4] sm:$0xf] %vm124_vm13, %v413_v43 }
  0x32   :  { %v113_v13 = vsel %vm33_vm0, %v95_v7, %v111_v11  ;;  %131 = vst.msk [vmem:[#allocation5] sm:$0xf] %vm124_vm13, %v413_v43 }
  0x33   :  { %137 = vst [vmem:[#allocation1] ss:$2 sm:$0xff] %v116_v12  ;;  %v475_v14 = vmul.f32 %v113_v13, %v447_v1 }
  0x34   :  { %118 = vst [vmem:[%s589_s3] sm:$0xff] %v116_v12 }
  0x35   :  { %119 = vst [vmem:[%s589_s3 + $0x8] sm:$0xff] %v475_v14 }
  0x36   :  { %141 = vst [vmem:[#allocation1 + $0x10] ss:$2 sm:$0xff] %v475_v14 }
  0x3a   :  { %v485_v15 = vld.sshfl [vmem:[#allocation1] sm:$0xff pattern:$0x75316420]  ;;  %v487_v0 = vld.sshfl [vmem:[#allocation1 + $0x8] sm:$0xff pattern:$0x75316420] }
  0x3b   :  { %163 = vst [vmem:[#allocation1] ss:$2 sm:$0xff] %v116_v12 }
  0x3d   :  { %v489_v16 = vld.sshfl [vmem:[#allocation1 + $0x10] sm:$0xff pattern:$0x75316420]  ;;  %v491_v1 = vld.sshfl [vmem:[#allocation1 + $0x18] sm:$0xff pattern:$0x75316420] }
  0x3e   :  { %167 = vst [vmem:[#allocation1 + $0x10] ss:$2 sm:$0xff] %v475_v14  ;;  %v154_v27 = vsel %vm33_vm0, %v491_v1, 0.0  ;;  %v148_v1 = vsel %vm33_vm0, %v485_v15, 0.0 }
  0x42   :  { %v164_v17 = vld.sshfl [vmem:[#allocation1] sm:$0xff pattern:$0x75316420]  ;;  %v165_v18 = vld.sshfl [vmem:[#allocation1 + $0x8] sm:$0xff pattern:$0x75316420] }
  0x43   :  { %v174_v19 = vsel %vm33_vm0, %v164_v17, -inf  ;;  %v175_v20 = vsel %vm33_vm0, %v165_v18, -inf }
  0x44   :  { %v176_v21 = vmax.f32 %v174_v19, %v175_v20 }
  0x45   :  { %v168_v22 = vld.sshfl [vmem:[#allocation1 + $0x10] sm:$0xff pattern:$0x75316420]  ;;  %v169_v23 = vld.sshfl [vmem:[#allocation1 + $0x18] sm:$0xff pattern:$0x75316420] }
  0x46   :  { %177 = vmax.xlane.f32.xlu0 %v176_v21  ;;  %v179_v24 = vsel %vm33_vm0, %v168_v22, -inf  ;;  %v180_v25 = vsel %vm33_vm0, %v169_v23, -inf  ;;  %v412_v21 = vmov 0  }
  0x47   :  { %v181_v26 = vmax.f32 %v179_v24, %v180_v25  ;;  %127 = vst.msk [vmem:[#allocation3] sm:$0xf] %vm124_vm13, %v412_v21  ;;  %400 = vset.pattern.permute.xlu1 %v412_v21  ;;  %401 = vset.pattern.permute.xlu2 %v412_v21 }
  0x48   :  { %128 = vst.msk [vmem:[#allocation3 + $0x4] sm:$0xf] %vm124_vm13, %v412_v21  ;;  %399 = vset.pattern.permute.xlu0 %v412_v21 }
  0x49   :  { %129 = vst.msk [vmem:[#allocation4] sm:$0xf] %vm124_vm13, %v412_v21 }
  0x4a   :  { %130 = vst.msk [vmem:[#allocation4 + $0x4] sm:$0xf] %vm124_vm13, %v412_v21 }
  0x4e   :  { %182 = vmax.xlane.f32.xlu0 %v181_v26  ;;  %v153_v26 = vsel %vm33_vm0, %v489_v16, 0.0 }
  0x4f   :  { %v155_v28 = vadd.f32 %v154_v27, %v153_v26 }
  0xb9   :  { %v506_v36 = vpop.xlane.xlu0 %177 }
  0xba   :  { %v189_v38 = vperm.slane %v506_v36, %v188_v31  ;;  %vm300_vm14 = vcmp.gt.f32.partialorder %v506_v36, %v501_v34  ;;  %vm302_vm15 = vcmp.eq.f32.partialorder %v506_v36, %v501_v34 }
  0xbb   :  { %v304_v40 = vsel %vm300_vm14, %v506_v36, %v501_v34 }
  0xbc   :  { %vm196_vm1 = vcmp.eq.f32.partialorder %v116_v12, %v189_v38  ;;  %306 = vst.msk [vmem:[#allocation2] sm:$0xf] %vm124_vm13, %v304_v40 }
  0xbd   :  { %v203_v41 = vsel %vm196_vm1, %v202_v37, 16  ;;  %v253_v51 = vsel %vm196_vm1, %v252_v47, 16 }
  0xbe   :  { %205 = vst [vmem:[#allocation1] ss:$2 sm:$0xff] %v203_v41  ;;  %v149_v41 = vsel %vm33_vm0, %v487_v0, 0.0  ;;  %v134_v0 = vld [vmem:[#allocation5 + $0x4] sm:$0xf] }
  0xbf   :  { %v150_v42 = vadd.f32 %v149_v41, %v148_v1 }
  0xc1   :  { %v523_v45 = vpop.xlane.xlu0 %182 }
  0xc2   :  { %v193_v46 = vperm.slane %v523_v45, %v188_v31  ;;  %vm301_vm2 = vcmp.gt.f32.partialorder %v523_v45, %v521_v44 }
  0xc3   :  { %v305_v48 = vsel %vm301_vm2, %v523_v45, %v521_v44 }
  0xc4   :  { %vm197_vm3 = vcmp.eq.f32.partialorder %v475_v14, %v193_v46  ;;  %307 = vst.msk [vmem:[#allocation2 + $0x4] sm:$0xf] %vm124_vm13, %v305_v48 }
  0xc5   :  { %v204_v49 = vsel %vm197_vm3, %v202_v37, 16  ;;  %v206_v50 = vld.sshfl [vmem:[#allocation1] sm:$0xff pattern:$0x75316420]  ;;  %v254_v57 = vsel %vm197_vm3, %v252_v47, 16  ;;  %vm384_vm3 = vcmask 27648  }
  0xc6   :  { %209 = vst [vmem:[#allocation1 + $0x10] ss:$2 sm:$0xff] %v204_v49  ;;  %v207_v52 = vld.sshfl [vmem:[#allocation1 + $0x8] sm:$0xff pattern:$0x75316420] }
  0xc7   :  { %v212_v53 = vsel %vm33_vm0, %v206_v50, 2147483647  ;;  %v213_v54 = vsel %vm33_vm0, %v207_v52, 2147483647  ;;  %255 = vst [vmem:[#allocation1] ss:$2 sm:$0xff] %v253_v51 }
  0xc8   :  { %vm214_vm4 = vcmp.lt.s32.totalorder %v212_v53, %v213_v54  ;;  %v312_v50 = vld [vmem:[#allocation3] sm:$0xf] }
  0xc9   :  { %v215_v55 = vsel %vm214_vm4, %v212_v53, %v213_v54 }
  0xca   :  { %v217_v56 = vshra.s32 %v215_v55, 16  ;;  %v216_v20 = vand.u32 65535, %v215_v55 }
  0xcc   :  { %v219_v58 = vcvt.s32.f32 %v217_v56  ;;  %v218_v23 = vcvt.s32.f32 %v216_v20 }
  0xcd   :  { %v210_v59 = vld.sshfl [vmem:[#allocation1 + $0x10] sm:$0xff pattern:$0x75316420]  ;;  %v211_v60 = vld.sshfl [vmem:[#allocation1 + $0x18] sm:$0xff pattern:$0x75316420] }
  0xce   :  { %220 = vmin.xlane.f32.xlu2 %v219_v58  ;;  %v256_v61 = vld.sshfl [vmem:[#allocation1] sm:$0xff pattern:$0x75316420]  ;;  %v257_v62 = vld.sshfl [vmem:[#allocation1 + $0x8] sm:$0xff pattern:$0x75316420] }
  0xcf   :  { %v262_v63 = vsel %vm33_vm0, %v256_v61, 2147483647  ;;  %v263_v2 = vsel %vm33_vm0, %v257_v62, 2147483647  ;;  %v230_v3 = vsel %vm33_vm0, %v210_v59, 2147483647 }
  0xd0   :  { %vm264_vm5 = vcmp.lt.s32.totalorder %v262_v63, %v263_v2  ;;  %v231_v4 = vsel %vm33_vm0, %v211_v60, 2147483647  ;;  %259 = vst [vmem:[#allocation1 + $0x10] ss:$2 sm:$0xff] %v254_v57 }
  0xd1   :  { %v265_v5 = vsel %vm264_vm5, %v262_v63, %v263_v2  ;;  %vm232_vm6 = vcmp.lt.s32.totalorder %v230_v3, %v231_v4 }
  0xd2   :  { %v267_v6 = vshra.s32 %v265_v5, 16  ;;  %v233_v7 = vsel %vm232_vm6, %v230_v3, %v231_v4  ;;  %v266_v25 = vand.u32 65535, %v265_v5 }
  0xd3   :  { %v235_v8 = vshra.s32 %v233_v7, 16  ;;  %v234_v33 = vand.u32 65535, %v233_v7 }
  0xd4   :  { %v269_v9 = vcvt.s32.f32 %v267_v6  ;;  %v268_v30 = vcvt.s32.f32 %v266_v25 }
  0xd5   :  { %v237_v10 = vcvt.s32.f32 %v235_v8  ;;  %v236_v37 = vcvt.s32.f32 %v234_v33 }
  0xd6   :  { %270 = vmin.xlane.f32.xlu1 %v269_v9 }
  0xd7   :  { %238 = vmin.xlane.f32.xlu2 %v237_v10  ;;  %v260_v11 = vld.sshfl [vmem:[#allocation1 + $0x10] sm:$0xff pattern:$0x75316420]  ;;  %v261_v12 = vld.sshfl [vmem:[#allocation1 + $0x18] sm:$0xff pattern:$0x75316420] }
  0xd8   :  { %v280_v13 = vsel %vm33_vm0, %v260_v11, 2147483647  ;;  %v281_v14 = vsel %vm33_vm0, %v261_v12, 2147483647  ;;  %v319_v11 = vld [vmem:[#allocation4 + $0x4] sm:$0xf] }
  0xd9   :  { %vm282_vm7 = vcmp.lt.s32.totalorder %v280_v13, %v281_v14 }
  0xda   :  { %v283_v17 = vsel %vm282_vm7, %v280_v13, %v281_v14 }
  0xdb   :  { %v285_v18 = vshra.s32 %v283_v17, 16  ;;  %v284_v35 = vand.u32 65535, %v283_v17  ;;  %v133_v17 = vld [vmem:[#allocation5] sm:$0xf] }
  0xdd   :  { %v287_v19 = vcvt.s32.f32 %v285_v18  ;;  %v286_v39 = vcvt.s32.f32 %v284_v35 }
  0xdf   :  { %288 = vmin.xlane.f32.xlu1 %v287_v19 }
 0x141   :  { %v221_v22 = vpop.xlane.xlu2 %220 }
 0x142   :  { %vm222_vm8 = vcmp.eq.f32.partialorder %v219_v58, %v221_v22  ;;  %v227_v46 = vcvt.f32.s32 %v221_v22  ;;  %v318_v58 = vld [vmem:[#allocation4] sm:$0xf] }
 0x143   :  { %v223_v24 = vsel %vm222_vm8, %v218_v23, inf }
 0x144   :  { %224 = vmin.xlane.f32.xlu2 %v223_v24  ;;  %v228_v48 = vshll.u32 %v227_v46, 16 }
 0x149   :  { %v271_v29 = vpop.xlane.xlu1 %270 }
 0x14a   :  { %vm272_vm9 = vcmp.eq.f32.partialorder %v269_v9, %v271_v29  ;;  %v239_v32 = vpop.xlane.xlu2 %238  ;;  %v277_v52 = vcvt.f32.s32 %v271_v29  ;;  %v313_v9 = vld [vmem:[#allocation3 + $0x4] sm:$0xf] }
 0x14b   :  { %v273_v31 = vsel %vm272_vm9, %v268_v30, inf  ;;  %vm240_vm10 = vcmp.eq.f32.partialorder %v237_v10, %v239_v32  ;;  %v245_v60 = vcvt.f32.s32 %v239_v32 }
 0x14c   :  { %274 = vmin.xlane.f32.xlu0 %v273_v31  ;;  %156 = vadd.xlane.f32.xlu2 %v155_v28  ;;  %v241_v40 = vsel %vm240_vm10, %v236_v37, inf  ;;  %v278_v55 = vshll.u32 %v277_v52, 16 }
 0x14d   :  { %v246_v4 = vshll.u32 %v245_v60, 16 }
 0x152   :  { %v289_v38 = vpop.xlane.xlu1 %288 }
 0x153   :  { %vm290_vm11 = vcmp.eq.f32.partialorder %v287_v19, %v289_v38  ;;  %v295_v61 = vcvt.f32.s32 %v289_v38 }
 0x154   :  { %v291_v16 = vsel %vm290_vm11, %v286_v39, inf  ;;  %242 = vmin.xlane.f32.xlu0 %v241_v40 }
 0x155   :  { %292 = vmin.xlane.f32.xlu1 %v291_v16  ;;  %v296_v7 = vshll.u32 %v295_v61, 16 }
 0x15d   :  { %151 = vadd.xlane.f32.xlu1 %v150_v42 }
 0x1b7   :  { %v225_v47 = vpop.xlane.xlu2 %224 }
 0x1b8   :  { %v226_v49 = vcvt.f32.s32 %v225_v47 }
 0x1ba   :  { %v229_v51 = vadd.s32 %v228_v48, %v226_v49 }
 0x1bc   :  { %v314_v15 = vsel %vm300_vm14, %v229_v51, %v312_v50 }
 0x1bd   :  { %316 = vst.msk [vmem:[#allocation3] sm:$0xf] %vm124_vm13, %v314_v15 }
 0x1bf   :  { %v157_v53 = vpop.xlane.xlu2 %156  ;;  %v275_v54 = vpop.xlane.xlu0 %274 }
 0x1c0   :  { %v159_v56 = vadd.f32 %v157_v53, %v134_v0  ;;  %v276_v57 = vcvt.f32.s32 %v275_v54 }
 0x1c2   :  { %162 = vst.msk [vmem:[#allocation5 + $0x4] sm:$0xf] %vm124_vm13, %v159_v56  ;;  %v279_v59 = vadd.s32 %v278_v55, %v276_v57 }
 0x1c4   :  { %vm320_vm0 = vcmp.lt.s32.totalorder %v318_v58, %v279_v59  ;;  %v335_v34 = vld [vmem:[#allocation3] sm:$0xf] }
 0x1c5   :  { %v321_v62 = vsel %vm320_vm0, %v318_v58, %v279_v59  ;;  %v337_v23 = vcvt.s32.f32 %v335_v34 }
 0x1c6   :  { %v324_v63 = vsel %vm302_vm15, %v321_v62, %v318_v58 }
 0x1c7   :  { %v326_v2 = vsel %vm300_vm14, %v279_v59, %v324_v63  ;;  %v243_v3 = vpop.xlane.xlu0 %242  ;;  %vm303_vm14 = vcmp.eq.f32.partialorder %v523_v45, %v521_v44  ;;  %v333_v45 = vlaneseq }
 0x1c8   :  { %328 = vst.msk [vmem:[#allocation4] sm:$0xf] %vm124_vm13, %v326_v2  ;;  %v293_v5 = vpop.xlane.xlu1 %292  ;;  %v244_v6 = vcvt.f32.s32 %v243_v3 }
 0x1c9   :  { %v294_v8 = vcvt.f32.s32 %v293_v5  ;;  %v347_v10 = vld [vmem:[#allocation5 + $0x4] sm:$0xf]  ;;  %v334_v31 = vand.u32 127, %v333_v45 }
 0x1ca   :  { %v247_v12 = vadd.s32 %v246_v4, %v244_v6  ;;  %355 = vperm.xlu1 %400, %v347_v10  }
 0x1cb   :  { %v297_v13 = vadd.s32 %v296_v7, %v294_v8  ;;  %vm345_vm15 = vcmp.eq.s32.totalorder %v334_v31, 2  ;;  %vm344_vm1 = vcmp.eq.s32.totalorder %v334_v31, 1 }
 0x1cc   :  { %v315_v14 = vsel %vm301_vm2, %v247_v12, %v313_v9 }
 0x1cd   :  { %vm322_vm12 = vcmp.lt.s32.totalorder %v319_v11, %v297_v13  ;;  %317 = vst.msk [vmem:[#allocation3 + $0x4] sm:$0xf] %vm124_vm13, %v315_v14 }
 0x1ce   :  { %v323_v36 = vsel %vm322_vm12, %v319_v11, %v297_v13 }
 0x1cf   :  { %v325_v18 = vsel %vm303_vm14, %v323_v36, %v319_v11  ;;  %v339_v19 = vld [vmem:[#allocation4] sm:$0xf] }
 0x1d0   :  { %v327_v20 = vsel %vm301_vm2, %v297_v13, %v325_v18  ;;  %v152_v21 = vpop.xlane.xlu1 %151  ;;  %v341_v22 = vcvt.s32.f32 %v339_v19  ;;  %vm343_vm2 = vcmp.eq.s32.totalorder %v334_v31, 0 }
 0x1d1   :  { %329 = vst.msk [vmem:[#allocation4 + $0x4] sm:$0xf] %vm124_vm13, %v327_v20  ;;  %v158_v24 = vadd.f32 %v152_v21, %v133_v17 }
 0x1d2   :  { %362 = vperm.xlu2 %401, %v341_v22   ;;  %374 = vperm.xlu1 %400, %v337_v23  }
 0x1d3   :  { %161 = vst.msk [vmem:[#allocation5] sm:$0xf] %vm124_vm13, %v158_v24 }
 0x1d4   :  { %v336_v28 = vld [vmem:[#allocation3 + $0x4] sm:$0xf] }
 0x1d5   :  { %v338_v29 = vcvt.s32.f32 %v336_v28 }
 0x1d8   :  { %v340_v25 = vld [vmem:[#allocation4 + $0x4] sm:$0xf] }
 0x1d9   :  { %v342_v26 = vcvt.s32.f32 %v340_v25 }
 0x1da   :  { %v346_v27 = vld [vmem:[#allocation5] sm:$0xf] }
 0x1db   :  { %367 = vperm.xlu2 %401, %v342_v26   ;;  %350 = vperm.xlu0 %399, %v346_v27  }
 0x1e3   :  { %379 = vperm.xlu2 %401, %v338_v29  }
 0x22c   :  { %v363_v44 = vpop.permute.xlu2 %362 }
 0x235   :  { %v368_v30 = vpop.permute.xlu2 %367 }
 0x23c   :  { %v356_v32 = vpop.permute.xlu1 %355 }
 0x23d   :  { %v359_v33 = vsel %vm345_vm15, %v356_v32, 0.0  ;;  %v380_v35 = vpop.permute.xlu2 %379 }
 0x23e   :  { %v371_v37 = vsel %vm344_vm1, %v368_v30, %v359_v33 }
 0x23f   :  { %v383_v38 = vsel %vm343_vm2, %v380_v35, %v371_v37 }
 0x240   :  { %386 = vst.msk [vmem:[%s592_s4 + $0x4] sm:$0xf] %vm384_vm3, %v383_v38 }
 0x244   :  { %v375_v16 = vpop.permute.xlu1 %374 }
 0x24d   :  { %v351_v39 = vpop.permute.xlu0 %350 }
 0x24e   :  { %v358_v40 = vsel %vm345_vm15, %v351_v39, 0.0 }
 0x24f   :  { %v370_v1 = vsel %vm344_vm1, %v363_v44, %v358_v40 }
 0x250   :  { %v382_v41 = vsel %vm343_vm2, %v375_v16, %v370_v1 }
 0x251   :  { %385 = vst.msk [vmem:[%s592_s4] sm:$0xf] %vm384_vm3, %v382_v41 }

</bundles_post_ra>
